<compile_context>
chip_gen: v6e
topology: v6e:2x2x1
jax: 0.10.0
libtpu: 0.0.40
codegen_flags: <defaults>
</compile_context>

<pallas_src>
import functools

import jax
import jax.numpy as jnp
from jax.experimental import pallas as pl
from jax.experimental.pallas import tpu as pltpu

_LANE = 128


def _round_up(x, m):
    return (x + m - 1) // m * m


def _plan_tiles(B, block_rows=None):
    """Rows are groups of 128 samples.  Returns (n_pad_rows, block_rows)."""
    n = _round_up(max(B, 1), _LANE) // _LANE
    if block_rows is None:
        if n <= 16:
            block_rows = n  # single full-extent block (allowed by the (8,128) rule)
        else:
            # Multiple of 8, <= ~64K samples/step, and <= ceil(n/2) so the grid
            # has >= 2 steps (v7x megacore split over the "parallel" axis).
            block_rows = min(512, max(8, _round_up((n + 1) // 2, 8)))
    n_pad = _round_up(n, block_rows)
    return n_pad, block_rows


def _meta_learner_kernel(w1_ref, b1_ref, w2_ref, b2_ref, x_ref, o_ref):
    # x_ref: [6, bs, 128] f32 feature-major block; x_ref[k] is a vreg-dense [bs,128] slab.
    # o_ref: [2, bs, 128] f32 (lane-dense stores).
    def fc1_row(j):
        acc = w1_ref[j * 6] * x_ref[0]
        for k in range(1, 6):
            acc = acc + w1_ref[j * 6 + k] * x_ref[k]
        return jnp.maximum(acc + b1_ref[j], 0.0)

    h0 = fc1_row(0)
    h1 = fc1_row(1)
    h2 = fc1_row(2)
    h3 = fc1_row(3)

    z0 = w2_ref[0] * h0 + w2_ref[1] * h1 + w2_ref[2] * h2 + w2_ref[3] * h3 + b2_ref[0]
    z1 = w2_ref[4] * h0 + w2_ref[5] * h1 + w2_ref[6] * h2 + w2_ref[7] * h3 + b2_ref[1]

    # 2-class softmax == sigmoid of the logit difference: one EUP exp + one
    # exact reciprocal per element; exp overflow/underflow saturates correctly.
    p0 = pl.reciprocal(1.0 + jnp.exp(z1 - z0), approx=False)
    o_ref[0] = p0
    o_ref[1] = 1.0 - p0


@functools.partial(jax.jit, static_argnames=("block_rows", "class_major"))
def meta_learner_forward(x, w1, b1, w2, b2, block_rows=None, class_major=False):
    """x: [B, 6] f32.  Weights in PyTorch convention: w1 [4,6], b1 [4], w2 [2,4], b2 [2].

    Returns [B, 2] probabilities (or [2, B] if class_major=True, which avoids
    the final boundary transpose entirely).
    """
    B = x.shape[0]
    n_pad, bs = _plan_tiles(B, block_rows)
    Bp = n_pad * _LANE

    # One boundary relayout: [B,6] -> feature-major [6,Bp] (pad fused into the
    # same copy) -> free reshape to the vreg-dense 3-D layout [6, n_pad, 128].
    xt = jnp.transpose(x.astype(jnp.float32), (1, 0))
    if Bp != B:
        xt = jnp.pad(xt, ((0, 0), (0, Bp - B)))
    xf = xt.reshape(6, n_pad, _LANE)

    grid = (n_pad // bs,)
    smem = pl.BlockSpec(memory_space=pltpu.MemorySpace.SMEM)

    out3 = pl.pallas_call(
        _meta_learner_kernel,
        out_shape=jax.ShapeDtypeStruct((2, n_pad, _LANE), jnp.float32),
        grid=grid,
        in_specs=[
            smem,  # w1 flat [24]
            smem,  # b1 [4]
            smem,  # w2 flat [8]
            smem,  # b2 [2]
            pl.BlockSpec((6, bs, _LANE), lambda i: (0, i, 0)),  # x tile
        ],
        out_specs=pl.BlockSpec((2, bs, _LANE), lambda i: (0, i, 0)),
        compiler_params=pltpu.CompilerParams(
            dimension_semantics=("parallel",),
            vmem_limit_bytes=48 * 1024 * 1024,
        ),
        cost_estimate=pl.CostEstimate(
            flops=72 * Bp, transcendentals=1 * Bp, bytes_accessed=32 * Bp),
    )(
        w1.reshape(-1).astype(jnp.float32),
        b1.reshape(-1).astype(jnp.float32),
        w2.reshape(-1).astype(jnp.float32),
        b2.reshape(-1).astype(jnp.float32),
        xf,
    )

    probs = out3.reshape(2, Bp)[:, :B]
    if class_major:
        return probs          # [2, B]: no output transpose for fused consumers
    return probs.T            # [B, 2]: PyTorch module contract


def init_params(key):
    # Deterministic init mimicking nn.Linear (uniform(-1/sqrt(fan_in), +)),
    # PyTorch [out_features, in_features] convention.
    k1, k2, k3, k4 = jax.random.split(key, 4)
    lim1 = 1.0 / jnp.sqrt(6.0)
    lim2 = 1.0 / jnp.sqrt(4.0)
    w1 = jax.random.uniform(k1, (4, 6), jnp.float32, -lim1, lim1)
    b1 = jax.random.uniform(k2, (4,), jnp.float32, -lim1, lim1)
    w2 = jax.random.uniform(k3, (2, 4), jnp.float32, -lim2, lim2)
    b2 = jax.random.uniform(k4, (2,), jnp.float32, -lim2, lim2)
    return w1, b1, w2, b2


def reference_forward(x, w1, b1, w2, b2):
    h = jnp.maximum(x @ w1.T + b1, 0.0)
    z = h @ w2.T + b2
    return jax.nn.softmax(z, axis=1)


if __name__ == "__main__":
    key = jax.random.PRNGKey(0)
    kx, kp = jax.random.split(key)
    w1, b1, w2, b2 = init_params(kp)

    # B=4096 exercises the multi-step ("parallel") pipelined grid;
    # B=1000 exercises the padded / ragged-batch path.
    for B in (4096, 1000):
        x = jax.random.normal(jax.random.fold_in(kx, B), (B, 6), jnp.float32)
        out = jax.block_until_ready(meta_learner_forward(x, w1, b1, w2, b2))
        ref = reference_forward(x, w1, b1, w2, b2)
        assert out.shape == (B, 2)
        assert jnp.allclose(out, ref, atol=1e-5, rtol=1e-5)
        assert jnp.allclose(jnp.sum(out, axis=1), jnp.ones((B,)), atol=1e-5)

    print("KERNEL_OK")
</pallas_src>

<mosaic_0001>
module attributes {stable_mosaic.version = 11 : i64} {
  func.func @_meta_learner_kernel(%arg0: i32, %arg1: memref<24xf32, #tpu.memory_space<smem>>, %arg2: memref<4xf32, #tpu.memory_space<smem>>, %arg3: memref<8xf32, #tpu.memory_space<smem>>, %arg4: memref<2xf32, #tpu.memory_space<smem>>, %arg5: memref<6x16x128xf32, #tpu.memory_space<vmem>>, %arg6: memref<2x16x128xf32, #tpu.memory_space<vmem>>) attributes {dimension_semantics = [#tpu.dimension_semantics<parallel>], iteration_bounds = array<i64: 2>, scalar_prefetch = 0 : i64, scratch_operands = 0 : i64, tpu.core_type = #tpu.core_type<tc>, window_params = [{transform_indices = @transform_0, window_bounds = array<i64: 24>}, {transform_indices = @transform_1, window_bounds = array<i64: 4>}, {transform_indices = @transform_2, window_bounds = array<i64: 8>}, {transform_indices = @transform_3, window_bounds = array<i64: 2>}, {transform_indices = @transform_4, window_bounds = array<i64: 6, 16, 128>}, {transform_indices = @transform_5, window_bounds = array<i64: 2, 16, 128>}]} {
    %c0 = arith.constant 0 : index
    %0 = memref.load %arg1[%c0] : memref<24xf32, #tpu.memory_space<smem>>
    %c0_0 = arith.constant 0 : index
    %c0_1 = arith.constant 0 : index
    %c0_2 = arith.constant 0 : index
    %1 = vector.load %arg5[%c0_0, %c0_1, %c0_2] : memref<6x16x128xf32, #tpu.memory_space<vmem>>, vector<1x16x128xf32>
    %2 = vector.shape_cast %1 : vector<1x16x128xf32> to vector<16x128xf32>
    %3 = vector.broadcast %0 : f32 to vector<16x128xf32>
    %4 = arith.mulf %3, %2 : vector<16x128xf32>
    %c1 = arith.constant 1 : index
    %5 = memref.load %arg1[%c1] : memref<24xf32, #tpu.memory_space<smem>>
    %c1_3 = arith.constant 1 : index
    %c0_4 = arith.constant 0 : index
    %c0_5 = arith.constant 0 : index
    %6 = vector.load %arg5[%c1_3, %c0_4, %c0_5] : memref<6x16x128xf32, #tpu.memory_space<vmem>>, vector<1x16x128xf32>
    %7 = vector.shape_cast %6 : vector<1x16x128xf32> to vector<16x128xf32>
    %8 = vector.broadcast %5 : f32 to vector<16x128xf32>
    %9 = arith.mulf %8, %7 : vector<16x128xf32>
    %10 = arith.addf %4, %9 : vector<16x128xf32>
    %c2 = arith.constant 2 : index
    %11 = memref.load %arg1[%c2] : memref<24xf32, #tpu.memory_space<smem>>
    %c2_6 = arith.constant 2 : index
    %c0_7 = arith.constant 0 : index
    %c0_8 = arith.constant 0 : index
    %12 = vector.load %arg5[%c2_6, %c0_7, %c0_8] : memref<6x16x128xf32, #tpu.memory_space<vmem>>, vector<1x16x128xf32>
    %13 = vector.shape_cast %12 : vector<1x16x128xf32> to vector<16x128xf32>
    %14 = vector.broadcast %11 : f32 to vector<16x128xf32>
    %15 = arith.mulf %14, %13 : vector<16x128xf32>
    %16 = arith.addf %10, %15 : vector<16x128xf32>
    %c3 = arith.constant 3 : index
    %17 = memref.load %arg1[%c3] : memref<24xf32, #tpu.memory_space<smem>>
    %c3_9 = arith.constant 3 : index
    %c0_10 = arith.constant 0 : index
    %c0_11 = arith.constant 0 : index
    %18 = vector.load %arg5[%c3_9, %c0_10, %c0_11] : memref<6x16x128xf32, #tpu.memory_space<vmem>>, vector<1x16x128xf32>
    %19 = vector.shape_cast %18 : vector<1x16x128xf32> to vector<16x128xf32>
    %20 = vector.broadcast %17 : f32 to vector<16x128xf32>
    %21 = arith.mulf %20, %19 : vector<16x128xf32>
    %22 = arith.addf %16, %21 : vector<16x128xf32>
    %c4 = arith.constant 4 : index
    %23 = memref.load %arg1[%c4] : memref<24xf32, #tpu.memory_space<smem>>
    %c4_12 = arith.constant 4 : index
    %c0_13 = arith.constant 0 : index
    %c0_14 = arith.constant 0 : index
    %24 = vector.load %arg5[%c4_12, %c0_13, %c0_14] : memref<6x16x128xf32, #tpu.memory_space<vmem>>, vector<1x16x128xf32>
    %25 = vector.shape_cast %24 : vector<1x16x128xf32> to vector<16x128xf32>
    %26 = vector.broadcast %23 : f32 to vector<16x128xf32>
    %27 = arith.mulf %26, %25 : vector<16x128xf32>
    %28 = arith.addf %22, %27 : vector<16x128xf32>
    %c5 = arith.constant 5 : index
    %29 = memref.load %arg1[%c5] : memref<24xf32, #tpu.memory_space<smem>>
    %c5_15 = arith.constant 5 : index
    %c0_16 = arith.constant 0 : index
    %c0_17 = arith.constant 0 : index
    %30 = vector.load %arg5[%c5_15, %c0_16, %c0_17] : memref<6x16x128xf32, #tpu.memory_space<vmem>>, vector<1x16x128xf32>
    %31 = vector.shape_cast %30 : vector<1x16x128xf32> to vector<16x128xf32>
    %32 = vector.broadcast %29 : f32 to vector<16x128xf32>
    %33 = arith.mulf %32, %31 : vector<16x128xf32>
    %34 = arith.addf %28, %33 : vector<16x128xf32>
    %c0_18 = arith.constant 0 : index
    %35 = memref.load %arg2[%c0_18] : memref<4xf32, #tpu.memory_space<smem>>
    %36 = vector.broadcast %35 : f32 to vector<16x128xf32>
    %37 = arith.addf %34, %36 : vector<16x128xf32>
    %cst = arith.constant 0.000000e+00 : f32
    %38 = vector.broadcast %cst : f32 to vector<16x128xf32>
    %39 = arith.maximumf %37, %38 : vector<16x128xf32>
    %c6 = arith.constant 6 : index
    %40 = memref.load %arg1[%c6] : memref<24xf32, #tpu.memory_space<smem>>
    %c0_19 = arith.constant 0 : index
    %c0_20 = arith.constant 0 : index
    %c0_21 = arith.constant 0 : index
    %41 = vector.load %arg5[%c0_19, %c0_20, %c0_21] : memref<6x16x128xf32, #tpu.memory_space<vmem>>, vector<1x16x128xf32>
    %42 = vector.shape_cast %41 : vector<1x16x128xf32> to vector<16x128xf32>
    %43 = vector.broadcast %40 : f32 to vector<16x128xf32>
    %44 = arith.mulf %43, %42 : vector<16x128xf32>
    %c7 = arith.constant 7 : index
    %45 = memref.load %arg1[%c7] : memref<24xf32, #tpu.memory_space<smem>>
    %c1_22 = arith.constant 1 : index
    %c0_23 = arith.constant 0 : index
    %c0_24 = arith.constant 0 : index
    %46 = vector.load %arg5[%c1_22, %c0_23, %c0_24] : memref<6x16x128xf32, #tpu.memory_space<vmem>>, vector<1x16x128xf32>
    %47 = vector.shape_cast %46 : vector<1x16x128xf32> to vector<16x128xf32>
    %48 = vector.broadcast %45 : f32 to vector<16x128xf32>
    %49 = arith.mulf %48, %47 : vector<16x128xf32>
    %50 = arith.addf %44, %49 : vector<16x128xf32>
    %c8 = arith.constant 8 : index
    %51 = memref.load %arg1[%c8] : memref<24xf32, #tpu.memory_space<smem>>
    %c2_25 = arith.constant 2 : index
    %c0_26 = arith.constant 0 : index
    %c0_27 = arith.constant 0 : index
    %52 = vector.load %arg5[%c2_25, %c0_26, %c0_27] : memref<6x16x128xf32, #tpu.memory_space<vmem>>, vector<1x16x128xf32>
    %53 = vector.shape_cast %52 : vector<1x16x128xf32> to vector<16x128xf32>
    %54 = vector.broadcast %51 : f32 to vector<16x128xf32>
    %55 = arith.mulf %54, %53 : vector<16x128xf32>
    %56 = arith.addf %50, %55 : vector<16x128xf32>
    %c9 = arith.constant 9 : index
    %57 = memref.load %arg1[%c9] : memref<24xf32, #tpu.memory_space<smem>>
    %c3_28 = arith.constant 3 : index
    %c0_29 = arith.constant 0 : index
    %c0_30 = arith.constant 0 : index
    %58 = vector.load %arg5[%c3_28, %c0_29, %c0_30] : memref<6x16x128xf32, #tpu.memory_space<vmem>>, vector<1x16x128xf32>
    %59 = vector.shape_cast %58 : vector<1x16x128xf32> to vector<16x128xf32>
    %60 = vector.broadcast %57 : f32 to vector<16x128xf32>
    %61 = arith.mulf %60, %59 : vector<16x128xf32>
    %62 = arith.addf %56, %61 : vector<16x128xf32>
    %c10 = arith.constant 10 : index
    %63 = memref.load %arg1[%c10] : memref<24xf32, #tpu.memory_space<smem>>
    %c4_31 = arith.constant 4 : index
    %c0_32 = arith.constant 0 : index
    %c0_33 = arith.constant 0 : index
    %64 = vector.load %arg5[%c4_31, %c0_32, %c0_33] : memref<6x16x128xf32, #tpu.memory_space<vmem>>, vector<1x16x128xf32>
    %65 = vector.shape_cast %64 : vector<1x16x128xf32> to vector<16x128xf32>
    %66 = vector.broadcast %63 : f32 to vector<16x128xf32>
    %67 = arith.mulf %66, %65 : vector<16x128xf32>
    %68 = arith.addf %62, %67 : vector<16x128xf32>
    %c11 = arith.constant 11 : index
    %69 = memref.load %arg1[%c11] : memref<24xf32, #tpu.memory_space<smem>>
    %c5_34 = arith.constant 5 : index
    %c0_35 = arith.constant 0 : index
    %c0_36 = arith.constant 0 : index
    %70 = vector.load %arg5[%c5_34, %c0_35, %c0_36] : memref<6x16x128xf32, #tpu.memory_space<vmem>>, vector<1x16x128xf32>
    %71 = vector.shape_cast %70 : vector<1x16x128xf32> to vector<16x128xf32>
    %72 = vector.broadcast %69 : f32 to vector<16x128xf32>
    %73 = arith.mulf %72, %71 : vector<16x128xf32>
    %74 = arith.addf %68, %73 : vector<16x128xf32>
    %c1_37 = arith.constant 1 : index
    %75 = memref.load %arg2[%c1_37] : memref<4xf32, #tpu.memory_space<smem>>
    %76 = vector.broadcast %75 : f32 to vector<16x128xf32>
    %77 = arith.addf %74, %76 : vector<16x128xf32>
    %cst_38 = arith.constant 0.000000e+00 : f32
    %78 = vector.broadcast %cst_38 : f32 to vector<16x128xf32>
    %79 = arith.maximumf %77, %78 : vector<16x128xf32>
    %c12 = arith.constant 12 : index
    %80 = memref.load %arg1[%c12] : memref<24xf32, #tpu.memory_space<smem>>
    %c0_39 = arith.constant 0 : index
    %c0_40 = arith.constant 0 : index
    %c0_41 = arith.constant 0 : index
    %81 = vector.load %arg5[%c0_39, %c0_40, %c0_41] : memref<6x16x128xf32, #tpu.memory_space<vmem>>, vector<1x16x128xf32>
    %82 = vector.shape_cast %81 : vector<1x16x128xf32> to vector<16x128xf32>
    %83 = vector.broadcast %80 : f32 to vector<16x128xf32>
    %84 = arith.mulf %83, %82 : vector<16x128xf32>
    %c13 = arith.constant 13 : index
    %85 = memref.load %arg1[%c13] : memref<24xf32, #tpu.memory_space<smem>>
    %c1_42 = arith.constant 1 : index
    %c0_43 = arith.constant 0 : index
    %c0_44 = arith.constant 0 : index
    %86 = vector.load %arg5[%c1_42, %c0_43, %c0_44] : memref<6x16x128xf32, #tpu.memory_space<vmem>>, vector<1x16x128xf32>
    %87 = vector.shape_cast %86 : vector<1x16x128xf32> to vector<16x128xf32>
    %88 = vector.broadcast %85 : f32 to vector<16x128xf32>
    %89 = arith.mulf %88, %87 : vector<16x128xf32>
    %90 = arith.addf %84, %89 : vector<16x128xf32>
    %c14 = arith.constant 14 : index
    %91 = memref.load %arg1[%c14] : memref<24xf32, #tpu.memory_space<smem>>
    %c2_45 = arith.constant 2 : index
    %c0_46 = arith.constant 0 : index
    %c0_47 = arith.constant 0 : index
    %92 = vector.load %arg5[%c2_45, %c0_46, %c0_47] : memref<6x16x128xf32, #tpu.memory_space<vmem>>, vector<1x16x128xf32>
    %93 = vector.shape_cast %92 : vector<1x16x128xf32> to vector<16x128xf32>
    %94 = vector.broadcast %91 : f32 to vector<16x128xf32>
    %95 = arith.mulf %94, %93 : vector<16x128xf32>
    %96 = arith.addf %90, %95 : vector<16x128xf32>
    %c15 = arith.constant 15 : index
    %97 = memref.load %arg1[%c15] : memref<24xf32, #tpu.memory_space<smem>>
    %c3_48 = arith.constant 3 : index
    %c0_49 = arith.constant 0 : index
    %c0_50 = arith.constant 0 : index
    %98 = vector.load %arg5[%c3_48, %c0_49, %c0_50] : memref<6x16x128xf32, #tpu.memory_space<vmem>>, vector<1x16x128xf32>
    %99 = vector.shape_cast %98 : vector<1x16x128xf32> to vector<16x128xf32>
    %100 = vector.broadcast %97 : f32 to vector<16x128xf32>
    %101 = arith.mulf %100, %99 : vector<16x128xf32>
    %102 = arith.addf %96, %101 : vector<16x128xf32>
    %c16 = arith.constant 16 : index
    %103 = memref.load %arg1[%c16] : memref<24xf32, #tpu.memory_space<smem>>
    %c4_51 = arith.constant 4 : index
    %c0_52 = arith.constant 0 : index
    %c0_53 = arith.constant 0 : index
    %104 = vector.load %arg5[%c4_51, %c0_52, %c0_53] : memref<6x16x128xf32, #tpu.memory_space<vmem>>, vector<1x16x128xf32>
    %105 = vector.shape_cast %104 : vector<1x16x128xf32> to vector<16x128xf32>
    %106 = vector.broadcast %103 : f32 to vector<16x128xf32>
    %107 = arith.mulf %106, %105 : vector<16x128xf32>
    %108 = arith.addf %102, %107 : vector<16x128xf32>
    %c17 = arith.constant 17 : index
    %109 = memref.load %arg1[%c17] : memref<24xf32, #tpu.memory_space<smem>>
    %c5_54 = arith.constant 5 : index
    %c0_55 = arith.constant 0 : index
    %c0_56 = arith.constant 0 : index
    %110 = vector.load %arg5[%c5_54, %c0_55, %c0_56] : memref<6x16x128xf32, #tpu.memory_space<vmem>>, vector<1x16x128xf32>
    %111 = vector.shape_cast %110 : vector<1x16x128xf32> to vector<16x128xf32>
    %112 = vector.broadcast %109 : f32 to vector<16x128xf32>
    %113 = arith.mulf %112, %111 : vector<16x128xf32>
    %114 = arith.addf %108, %113 : vector<16x128xf32>
    %c2_57 = arith.constant 2 : index
    %115 = memref.load %arg2[%c2_57] : memref<4xf32, #tpu.memory_space<smem>>
    %116 = vector.broadcast %115 : f32 to vector<16x128xf32>
    %117 = arith.addf %114, %116 : vector<16x128xf32>
    %cst_58 = arith.constant 0.000000e+00 : f32
    %118 = vector.broadcast %cst_58 : f32 to vector<16x128xf32>
    %119 = arith.maximumf %117, %118 : vector<16x128xf32>
    %c18 = arith.constant 18 : index
    %120 = memref.load %arg1[%c18] : memref<24xf32, #tpu.memory_space<smem>>
    %c0_59 = arith.constant 0 : index
    %c0_60 = arith.constant 0 : index
    %c0_61 = arith.constant 0 : index
    %121 = vector.load %arg5[%c0_59, %c0_60, %c0_61] : memref<6x16x128xf32, #tpu.memory_space<vmem>>, vector<1x16x128xf32>
    %122 = vector.shape_cast %121 : vector<1x16x128xf32> to vector<16x128xf32>
    %123 = vector.broadcast %120 : f32 to vector<16x128xf32>
    %124 = arith.mulf %123, %122 : vector<16x128xf32>
    %c19 = arith.constant 19 : index
    %125 = memref.load %arg1[%c19] : memref<24xf32, #tpu.memory_space<smem>>
    %c1_62 = arith.constant 1 : index
    %c0_63 = arith.constant 0 : index
    %c0_64 = arith.constant 0 : index
    %126 = vector.load %arg5[%c1_62, %c0_63, %c0_64] : memref<6x16x128xf32, #tpu.memory_space<vmem>>, vector<1x16x128xf32>
    %127 = vector.shape_cast %126 : vector<1x16x128xf32> to vector<16x128xf32>
    %128 = vector.broadcast %125 : f32 to vector<16x128xf32>
    %129 = arith.mulf %128, %127 : vector<16x128xf32>
    %130 = arith.addf %124, %129 : vector<16x128xf32>
    %c20 = arith.constant 20 : index
    %131 = memref.load %arg1[%c20] : memref<24xf32, #tpu.memory_space<smem>>
    %c2_65 = arith.constant 2 : index
    %c0_66 = arith.constant 0 : index
    %c0_67 = arith.constant 0 : index
    %132 = vector.load %arg5[%c2_65, %c0_66, %c0_67] : memref<6x16x128xf32, #tpu.memory_space<vmem>>, vector<1x16x128xf32>
    %133 = vector.shape_cast %132 : vector<1x16x128xf32> to vector<16x128xf32>
    %134 = vector.broadcast %131 : f32 to vector<16x128xf32>
    %135 = arith.mulf %134, %133 : vector<16x128xf32>
    %136 = arith.addf %130, %135 : vector<16x128xf32>
    %c21 = arith.constant 21 : index
    %137 = memref.load %arg1[%c21] : memref<24xf32, #tpu.memory_space<smem>>
    %c3_68 = arith.constant 3 : index
    %c0_69 = arith.constant 0 : index
    %c0_70 = arith.constant 0 : index
    %138 = vector.load %arg5[%c3_68, %c0_69, %c0_70] : memref<6x16x128xf32, #tpu.memory_space<vmem>>, vector<1x16x128xf32>
    %139 = vector.shape_cast %138 : vector<1x16x128xf32> to vector<16x128xf32>
    %140 = vector.broadcast %137 : f32 to vector<16x128xf32>
    %141 = arith.mulf %140, %139 : vector<16x128xf32>
    %142 = arith.addf %136, %141 : vector<16x128xf32>
    %c22 = arith.constant 22 : index
    %143 = memref.load %arg1[%c22] : memref<24xf32, #tpu.memory_space<smem>>
    %c4_71 = arith.constant 4 : index
    %c0_72 = arith.constant 0 : index
    %c0_73 = arith.constant 0 : index
    %144 = vector.load %arg5[%c4_71, %c0_72, %c0_73] : memref<6x16x128xf32, #tpu.memory_space<vmem>>, vector<1x16x128xf32>
    %145 = vector.shape_cast %144 : vector<1x16x128xf32> to vector<16x128xf32>
    %146 = vector.broadcast %143 : f32 to vector<16x128xf32>
    %147 = arith.mulf %146, %145 : vector<16x128xf32>
    %148 = arith.addf %142, %147 : vector<16x128xf32>
    %c23 = arith.constant 23 : index
    %149 = memref.load %arg1[%c23] : memref<24xf32, #tpu.memory_space<smem>>
    %c5_74 = arith.constant 5 : index
    %c0_75 = arith.constant 0 : index
    %c0_76 = arith.constant 0 : index
    %150 = vector.load %arg5[%c5_74, %c0_75, %c0_76] : memref<6x16x128xf32, #tpu.memory_space<vmem>>, vector<1x16x128xf32>
    %151 = vector.shape_cast %150 : vector<1x16x128xf32> to vector<16x128xf32>
    %152 = vector.broadcast %149 : f32 to vector<16x128xf32>
    %153 = arith.mulf %152, %151 : vector<16x128xf32>
    %154 = arith.addf %148, %153 : vector<16x128xf32>
    %c3_77 = arith.constant 3 : index
    %155 = memref.load %arg2[%c3_77] : memref<4xf32, #tpu.memory_space<smem>>
    %156 = vector.broadcast %155 : f32 to vector<16x128xf32>
    %157 = arith.addf %154, %156 : vector<16x128xf32>
    %cst_78 = arith.constant 0.000000e+00 : f32
    %158 = vector.broadcast %cst_78 : f32 to vector<16x128xf32>
    %159 = arith.maximumf %157, %158 : vector<16x128xf32>
    %c0_79 = arith.constant 0 : index
    %160 = memref.load %arg3[%c0_79] : memref<8xf32, #tpu.memory_space<smem>>
    %161 = vector.broadcast %160 : f32 to vector<16x128xf32>
    %162 = arith.mulf %161, %39 : vector<16x128xf32>
    %c1_80 = arith.constant 1 : index
    %163 = memref.load %arg3[%c1_80] : memref<8xf32, #tpu.memory_space<smem>>
    %164 = vector.broadcast %163 : f32 to vector<16x128xf32>
    %165 = arith.mulf %164, %79 : vector<16x128xf32>
    %166 = arith.addf %162, %165 : vector<16x128xf32>
    %c2_81 = arith.constant 2 : index
    %167 = memref.load %arg3[%c2_81] : memref<8xf32, #tpu.memory_space<smem>>
    %168 = vector.broadcast %167 : f32 to vector<16x128xf32>
    %169 = arith.mulf %168, %119 : vector<16x128xf32>
    %170 = arith.addf %166, %169 : vector<16x128xf32>
    %c3_82 = arith.constant 3 : index
    %171 = memref.load %arg3[%c3_82] : memref<8xf32, #tpu.memory_space<smem>>
    %172 = vector.broadcast %171 : f32 to vector<16x128xf32>
    %173 = arith.mulf %172, %159 : vector<16x128xf32>
    %174 = arith.addf %170, %173 : vector<16x128xf32>
    %c0_83 = arith.constant 0 : index
    %175 = memref.load %arg4[%c0_83] : memref<2xf32, #tpu.memory_space<smem>>
    %176 = vector.broadcast %175 : f32 to vector<16x128xf32>
    %177 = arith.addf %174, %176 : vector<16x128xf32>
    %c4_84 = arith.constant 4 : index
    %178 = memref.load %arg3[%c4_84] : memref<8xf32, #tpu.memory_space<smem>>
    %179 = vector.broadcast %178 : f32 to vector<16x128xf32>
    %180 = arith.mulf %179, %39 : vector<16x128xf32>
    %c5_85 = arith.constant 5 : index
    %181 = memref.load %arg3[%c5_85] : memref<8xf32, #tpu.memory_space<smem>>
    %182 = vector.broadcast %181 : f32 to vector<16x128xf32>
    %183 = arith.mulf %182, %79 : vector<16x128xf32>
    %184 = arith.addf %180, %183 : vector<16x128xf32>
    %c6_86 = arith.constant 6 : index
    %185 = memref.load %arg3[%c6_86] : memref<8xf32, #tpu.memory_space<smem>>
    %186 = vector.broadcast %185 : f32 to vector<16x128xf32>
    %187 = arith.mulf %186, %119 : vector<16x128xf32>
    %188 = arith.addf %184, %187 : vector<16x128xf32>
    %c7_87 = arith.constant 7 : index
    %189 = memref.load %arg3[%c7_87] : memref<8xf32, #tpu.memory_space<smem>>
    %190 = vector.broadcast %189 : f32 to vector<16x128xf32>
    %191 = arith.mulf %190, %159 : vector<16x128xf32>
    %192 = arith.addf %188, %191 : vector<16x128xf32>
    %c1_88 = arith.constant 1 : index
    %193 = memref.load %arg4[%c1_88] : memref<2xf32, #tpu.memory_space<smem>>
    %194 = vector.broadcast %193 : f32 to vector<16x128xf32>
    %195 = arith.addf %192, %194 : vector<16x128xf32>
    %196 = arith.subf %195, %177 : vector<16x128xf32>
    %197 = math.exp %196 : vector<16x128xf32>
    %cst_89 = arith.constant 1.000000e+00 : f32
    %198 = vector.broadcast %cst_89 : f32 to vector<16x128xf32>
    %199 = arith.addf %198, %197 : vector<16x128xf32>
    %200 = tpu.reciprocal %199 : vector<16x128xf32> -> vector<16x128xf32>
    %c0_90 = arith.constant 0 : index
    %c0_91 = arith.constant 0 : index
    %c0_92 = arith.constant 0 : index
    %201 = vector.load %arg6[%c0_90, %c0_91, %c0_92] : memref<2x16x128xf32, #tpu.memory_space<vmem>>, vector<1x16x128xf32>
    %202 = vector.shape_cast %201 : vector<1x16x128xf32> to vector<16x128xf32>
    %203 = vector.shape_cast %200 : vector<16x128xf32> to vector<1x16x128xf32>
    tpu.vector_store %arg6[%c0_90, %c0_91, %c0_92], %203 {strides = array<i32>} : memref<2x16x128xf32, #tpu.memory_space<vmem>>, vector<1x16x128xf32>,
    %cst_93 = arith.constant 1.000000e+00 : f32
    %204 = vector.broadcast %cst_93 : f32 to vector<16x128xf32>
    %205 = arith.subf %204, %200 : vector<16x128xf32>
    %c1_94 = arith.constant 1 : index
    %c0_95 = arith.constant 0 : index
    %c0_96 = arith.constant 0 : index
    %206 = vector.load %arg6[%c1_94, %c0_95, %c0_96] : memref<2x16x128xf32, #tpu.memory_space<vmem>>, vector<1x16x128xf32>
    %207 = vector.shape_cast %206 : vector<1x16x128xf32> to vector<16x128xf32>
    %208 = vector.shape_cast %205 : vector<16x128xf32> to vector<1x16x128xf32>
    tpu.vector_store %arg6[%c1_94, %c0_95, %c0_96], %208 {strides = array<i32>} : memref<2x16x128xf32, #tpu.memory_space<vmem>>, vector<1x16x128xf32>,
    return
  }
  func.func @transform_0(%arg0: i32) -> i32 {
    %c0_i32 = arith.constant 0 : i32
    %c0_i32_0 = arith.constant 0 : i32
    return %c0_i32 : i32
  }
  func.func @transform_1(%arg0: i32) -> i32 {
    %c0_i32 = arith.constant 0 : i32
    %c0_i32_0 = arith.constant 0 : i32
    return %c0_i32 : i32
  }
  func.func @transform_2(%arg0: i32) -> i32 {
    %c0_i32 = arith.constant 0 : i32
    %c0_i32_0 = arith.constant 0 : i32
    return %c0_i32 : i32
  }
  func.func @transform_3(%arg0: i32) -> i32 {
    %c0_i32 = arith.constant 0 : i32
    %c0_i32_0 = arith.constant 0 : i32
    return %c0_i32 : i32
  }
  func.func @transform_4(%arg0: i32) -> (i32, i32, i32) {
    %c0_i32 = arith.constant 0 : i32
    %c0_i32_0 = arith.constant 0 : i32
    %c0_i32_1 = arith.constant 0 : i32
    return %c0_i32, %arg0, %c0_i32_0 : i32, i32, i32
  }
  func.func @transform_5(%arg0: i32) -> (i32, i32, i32) {
    %c0_i32 = arith.constant 0 : i32
    %c0_i32_0 = arith.constant 0 : i32
    %c0_i32_1 = arith.constant 0 : i32
    return %c0_i32, %arg0, %c0_i32_0 : i32, i32, i32
  }
}

</mosaic_0001>

<bundles_post_ra>
// kernel: meta_learner_forward.1
= control target key start
LH: loop header
LB: loop body
LE: loop exit
PB: predicated region body
PF: predicated region fallthrough
CT: control target
= control target key end

     0   :  { %10 = vsyncpa [#allocation3], 0  ;;  %s1382_s0 = inlined_call_operand.vmem [shape: f32[24], index: 0, kind: input, shape index: {}]   ;;  %s1383_s1 = inlined_call_operand.vmem [shape: f32[4], index: 1, kind: input, shape index: {}]   ;;  %s1384_s2 = inlined_call_operand.vmem [shape: f32[8], index: 2, kind: input, shape index: {}]   ;;  %s1385_s3 = inlined_call_operand.vmem [shape: f32[2], index: 3, kind: input, shape index: {}]   ;;  %s1386_s4 = inlined_call_operand.vmem [shape: f32[6,32,128], index: 4, kind: input, shape index: {}]   ;;  %s1387_s5 = inlined_call_operand.vmem [shape: f32[2,32,128], index: 5, kind: output, shape index: {}]  }
   0x1   :  { %11 = vsyncpa [#allocation5], 0 }
   0x2   :  { %12 = vsyncpa [#allocation8], 0  ;;  %s1025_s18 = smov 0   ;;  %s1027_s19 = smov 0  }
   0x3   :  { %s1029_s20 = smov 0  }
   0x4 LB: > { %s1041_s21 = sadd.s32 4294967295, %s989_s20   ;;  %s1044_s22 = sadd.s32 1, %s989_s20   ;;  %s989_s20 = sphi %s1029_s20, %s1405_s20   ;;  %s985_s19 = sphi %s1027_s19, %s1404_s19   ;;  %s981_s18 = sphi %s1025_s18, %s1403_s18  }
   0x5   : > { %s106_s23 = ssub.s32 %s989_s20, %s1044_s22  ;;  %s109_s24 = sadd.s32 1, %s985_s19 }
   0x6   : > { %p107_p0 = scmp.eq.s32.totalorder %s106_s23, 0  ;;  %p116_p1 = scmp.ne.s32.totalorder %s985_s19, %s981_s18 }
   0x7   : > { %p117_p2 = scmp.eq.s32.totalorder %s989_s20, 0  ;;  %p146_p3 = scmp.eq.s32.totalorder %s1041_s21, 1 }
   0x8   : > { %s1054_s25 = scalar_select %p107_p0, %s985_s19, %s109_s24  }
   0x9   : > { %p1056_p4 = por %p117_p2, %p116_p1  ;;  %p1060_p5 = por %p146_p3, %p116_p1 }
   0xa   : > { %p753_p6 = scmp.ge.s32.totalorder %s989_s20, 1  ;;  %p159_p7 = scmp.lt.s32.totalorder %s989_s20, 3 }
   0xb   : > { %s1390_s26 = scalar_select %p1056_p4, 1, 0 }
   0xc   : > { %s1391_s27 = scalar_select %p1060_p5, 1, 0 }
   0xd   : > { %p1388_p8 = scmp.eq.s32.totalorder %s1041_s21, 0  ;;  %p1067_p9 = pnand %p753_p6, %p159_p7 }
   0xe   : > { %s183_s6 = sshll.u32 %s1383_s1, 4  ;;  %s172_s9 = sshll.u32 %s1382_s0, 4  ;;  %s184_s6 = int_to_ptr.vmem [resolvable:$true] %s183_s6  ;;  %s173_s9 = int_to_ptr.vmem [resolvable:$true] %s172_s9 }
   0xf   : > { %s1392_s28 = scalar_select %p1067_p9, 1, 0 }
  0x10   : > { %p838_p10 = pneg %p1067_p9  ;;  %s194_s13 = sshll.u32 %s1384_s2, 4  ;;  %s1088_s13 = int_to_ptr.vmem [resolvable:$true] %s194_s13 }
  0x11   : > { %s205_s16 = sshll.u32 %s1385_s3, 4  ;;  %s895_s17 = scalar_lea.vmem %s184_s6, 16  ;;  %s206_s16 = int_to_ptr.vmem [resolvable:$true] %s205_s16 }
  0x12   : > { %p1081_p11 = pnand %p1388_p8, %p838_p10  ;;  %p896_p12 = scmp.ne.s32.totalorder %s184_s6, %s895_s17 }
  0x13   : > { %p903_p2 = scmp.lt.s32.totalorder %s184_s6, %s184_s6  ;;  %p904_p3 = scmp.lt.s32.totalorder %s895_s17, %s895_s17 }
  0x14   : > { %p897_p13 = pneg %p1081_p11 }
  0x15   : > { %p905_p6 = por %p904_p3, %p903_p2 }
  0x16   : > { %p898_p0 = pnand %p897_p13, %p896_p12 }
  0x18   : > { %p899_p1 = pneg %p898_p0 }
  0x1a   : > { %p906_p7 = pnand %p905_p6, %p899_p1 }
  0x1c   : > { %909 = shalt.err (!%p906_p7)
}
  0x1d   : > { %s991_s23 = smov [#allocation4]   ;;  %s910_s24 = scalar_lea.vmem %s173_s9, 16 }
  0x1e   : > { %844 = dma.vmem_to_smem (!%p1081_p11), %s184_s6, 16, %s991_s23, [#allocation5]  }
  0x1f   : > { %p911_p10 = scmp.ne.s32.totalorder %s173_s9, %s910_s24  ;;  %p918_p9 = scmp.lt.s32.totalorder %s173_s9, %s173_s9 }
  0x20   : > { %p919_p4 = scmp.lt.s32.totalorder %s910_s24, %s910_s24 }
  0x21   : > { %p913_p8 = pnand %p911_p10, %p897_p13 }
  0x22   : > { %p920_p12 = por %p919_p4, %p918_p9 }
  0x23   : > { %p914_p5 = pneg %p913_p8 }
  0x25   : > { %p921_p0 = pnand %p920_p12, %p914_p5 }
  0x27   : > { %924 = shalt.err (!%p921_p0)
}
  0x28   : > { %s992_s29 = smov [#allocation2]   ;;  %s925_s30 = scalar_lea.vmem %s1088_s13, 16 }
  0x29   : > { %841 = dma.vmem_to_smem (!%p1081_p11), %s173_s9, 16, %s992_s29, [#allocation3]  }
  0x2a   : > { %p926_p1 = scmp.ne.s32.totalorder %s1088_s13, %s925_s30  ;;  %p933_p8 = scmp.lt.s32.totalorder %s1088_s13, %s1088_s13 }
  0x2b   : > { %p934_p6 = scmp.lt.s32.totalorder %s925_s30, %s925_s30 }
  0x2c   : > { %p928_p2 = pnand %p926_p1, %p897_p13 }
  0x2d   : > { %p935_p4 = por %p934_p6, %p933_p8 }
  0x2e   : > { %p929_p3 = pneg %p928_p2 }
  0x30   : > { %p936_p5 = pnand %p935_p4, %p929_p3 }
  0x32   : > { %939 = shalt.err (!%p936_p5)
}
  0x33   : > { %s993_s6 = smov [#allocation6]   ;;  %s940_s9 = scalar_lea.vmem %s206_s16, 16 }
  0x34   : > { %847 = dma.vmem_to_smem (!%p1081_p11), %s1088_s13, 16, %s993_s6, [#allocation5]  }
  0x35   : > { %p941_p9 = scmp.ne.s32.totalorder %s206_s16, %s940_s9  ;;  %p948_p12 = scmp.lt.s32.totalorder %s206_s16, %s206_s16 }
  0x36   : > { %p949_p0 = scmp.lt.s32.totalorder %s940_s9, %s940_s9 }
  0x37   : > { %p943_p7 = pnand %p941_p9, %p897_p13 }
  0x38   : > { %p950_p1 = por %p949_p0, %p948_p12 }
  0x39   : > { %p944_p10 = pneg %p943_p7 }
  0x3b   : > { %p951_p2 = pnand %p950_p1, %p944_p10 }
  0x3d   : > { %954 = shalt.err (!%p951_p2)
}
  0x3e   : > { %s994_s11 = smov [#allocation7]   ;;  %p758_p3 = scmp.ge.s32.totalorder %s989_s20, 2 }
  0x3f   : > { %850 = dma.vmem_to_smem (!%p1081_p11), %s206_s16, 16, %s994_s11, [#allocation8]  }
  0x40   : > { %212 = sbr.rel (%p758_p3) target bundleno = 79 (0x4f), region = 32  ;;  %p1394_p8 = scmp.ne.s32.totalorder (!%p758_p3), %s1390_s26, 0 }
  0x45   : > { %215 = sbr.rel (!%p1394_p8) target bundleno = 79 (0x4f), region = 36  ;;  %s217_s12 = sand.u32 (%p1394_p8), 1, %s985_s19  }
  0x46   : > { %s818_s13 = sshll.u32 (%p1394_p8), %s989_s20, 4  ;;  %s820_s14 = smul.u32 (%p1394_p8), 96, %s217_s12 }
  0x47   : > { %s222_s23 = scalar_lea.vmem (%p1394_p8), %s1386_s4, %s818_s13 }
  0x48   : > { %v273_v0 = vld [vmem:[%s222_s23] sm:$0xff] (%p1394_p8)  ;;  %v275_v1 = vld [vmem:[%s222_s23 + $0x8] sm:$0xff] (%p1394_p8)  ;;  %s219_s10 = scalar_lea.vmem (%p1394_p8), [#allocation9], %s820_s14 }
  0x49   : > { %v277_v2 = vld [vmem:[%s222_s23 + $0x20] sm:$0xff] (%p1394_p8)  ;;  %v279_v3 = vld [vmem:[%s222_s23 + $0x28] sm:$0xff] (%p1394_p8)  ;;  %274 = vst [vmem:[%s219_s10] sm:$0xff] (%p1394_p8), %v273_v0  ;;  %276 = vst [vmem:[%s219_s10 + $0x8] sm:$0xff] (%p1394_p8), %v275_v1 }
  0x4a   : > { %v281_v4 = vld [vmem:[%s222_s23 + $0x40] sm:$0xff]  ;;  %v283_v5 = vld [vmem:[%s222_s23 + $0x48] sm:$0xff]  ;;  %278 = vst [vmem:[%s219_s10 + $0x10] sm:$0xff] %v277_v2  ;;  %280 = vst [vmem:[%s219_s10 + $0x18] sm:$0xff] %v279_v3 }
  0x4b   : > { %282 = vst [vmem:[%s219_s10 + $0x20] sm:$0xff] %v281_v4  ;;  %284 = vst [vmem:[%s219_s10 + $0x28] sm:$0xff] %v283_v5  ;;  %v285_v6 = vld [vmem:[%s222_s23 + $0x60] sm:$0xff]  ;;  %v287_v7 = vld [vmem:[%s222_s23 + $0x68] sm:$0xff] }
  0x4c   : > { %v289_v8 = vld [vmem:[%s222_s23 + $0x80] sm:$0xff]  ;;  %286 = vst [vmem:[%s219_s10 + $0x30] sm:$0xff] %v285_v6  ;;  %288 = vst [vmem:[%s219_s10 + $0x38] sm:$0xff] %v287_v7  ;;  %v291_v9 = vld [vmem:[%s222_s23 + $0x88] sm:$0xff] }
  0x4d   : > { %290 = vst [vmem:[%s219_s10 + $0x40] sm:$0xff] %v289_v8  ;;  %v293_v10 = vld [vmem:[%s222_s23 + $0xa0] sm:$0xff]  ;;  %v295_v11 = vld [vmem:[%s222_s23 + $0xa8] sm:$0xff]  ;;  %292 = vst [vmem:[%s219_s10 + $0x48] sm:$0xff] %v291_v9 }
  0x4e   : > { %294 = vst [vmem:[%s219_s10 + $0x50] sm:$0xff] %v293_v10  ;;  %296 = vst [vmem:[%s219_s10 + $0x58] sm:$0xff] %v295_v11 }
  0x4f PF: > { %p1395_p11 = scmp.ne.s32.totalorder %s1392_s28, 0 }
  0x50   : > { %p1396_p13 = scmp.eq.s32.totalorder (!%p1395_p11), %s1041_s21, 0 }
  0x51   : > { %305 = sbr.rel (%p1395_p11) target bundleno = 204 (0xcc), region = 74 }
  0x56   : > { %968 = dma.done.wait (%p1396_p13), [#allocation3], 16   ;;  %p1397_p6 = pmov %p1396_p13 }
  0x58   : > { %970 = vsyncadd (%p1397_p6), [#allocation3], 4294967280  ;;  %p1398_p4 = pmov %p1397_p6 }
  0x5a   : > { %972 = dma.done.wait (%p1398_p4), [#allocation5], 32   ;;  %p1399_p5 = pmov %p1398_p4 }
  0x5b   : > { %p1400_p9 = pmov %p1398_p4 }
  0x5c   : > { %974 = vsyncadd (%p1399_p5), [#allocation5], 4294967264 }
  0x5d   : > { %976 = dma.done.wait (%p1400_p9), [#allocation8], 16   ;;  %p1401_p7 = pmov %p1398_p4 }
  0x5e   : > { %s324_s20 = sand.u32 1, %s981_s18  }
  0x5f   : > { %978 = vsyncadd (%p1401_p7), [#allocation8], 4294967280  ;;  %s821_s26 = smul.u32 96, %s324_s20 }
  0x61   : > { %s1149_s28 = scalar_lea.vmem [#allocation9], %s821_s26 }
  0x62   : > { %330 = sfence }
  0x63   : > { %s353_s16 = sld [smem:[#allocation2]]  ;;  %v1154_v12 = vld [vmem:[%s1149_s28] sm:$0xff]  ;;  %v1159_v13 = vld [vmem:[%s1149_s28 + $0x8] sm:$0xff]  ;;  %v1162_v14 = vld [vmem:[%s1149_s28 + $0x10] sm:$0xff]  ;;  %p1402_p10 = scmp.ne.s32.totalorder %s1391_s27, 0 }
  0x64   : > { %s767_s24 = sld [smem:[#allocation2 + $0x1]]  ;;  %v1167_v15 = vld [vmem:[%s1149_s28 + $0x18] sm:$0xff]  ;;  %v1170_v17 = vld [vmem:[%s1149_s28 + $0x20] sm:$0xff]  ;;  %v1175_v18 = vld [vmem:[%s1149_s28 + $0x28] sm:$0xff] }
  0x65   : > { %s770_s29 = sld [smem:[#allocation2 + $0x2]]  ;;  %v1179_v21 = vld [vmem:[%s1149_s28 + $0x30] sm:$0xff]  ;;  %v1189_v26 = vld [vmem:[%s1149_s28 + $0x38] sm:$0xff]  ;;  %v1194_v29 = vld [vmem:[%s1149_s28 + $0x40] sm:$0xff] }
  0x66   : > { %s1151_s30 = sld [smem:[#allocation2 + $0x3]]  ;;  %v1200_v31 = vld [vmem:[%s1149_s28 + $0x48] sm:$0xff]  ;;  %v1205_v35 = vld [vmem:[%s1149_s28 + $0x50] sm:$0xff]  ;;  %v1210_v37 = vld [vmem:[%s1149_s28 + $0x58] sm:$0xff] }
  0x67   : > { %s1156_s6 = sld [smem:[#allocation2 + $0x4]] }
  0x68   : > { %s1164_s7 = sld [smem:[#allocation2 + $0x5]] }
  0x69   : > { %v356_v16 = vstv %s353_s16  ;;  %s1172_s8 = sld [smem:[#allocation4]] }
  0x6a   : > { %v357_v19 = vmul.f32 %v356_v16, %v1154_v12  ;;  %v363_v20 = vstv %s767_s24  ;;  %s1181_s9 = sld [smem:[#allocation2 + $0x6]]  ;;  %v358_v22 = vmul.f32 %v356_v16, %v1159_v13 }
  0x6b   : > { %v364_v23 = vmul.f32 %v1162_v14, %v363_v20  ;;  %v372_v24 = vstv %s770_s29  ;;  %s1185_s11 = sld [smem:[#allocation2 + $0x7]]  ;;  %v365_v25 = vmul.f32 %v1167_v15, %v363_v20 }
  0x6c   : > { %v373_v27 = vmul.f32 %v1170_v17, %v372_v24  ;;  %v381_v28 = vstv %s1151_s30  ;;  %s1196_s12 = sld [smem:[#allocation2 + $0x8]]  ;;  %v374_v30 = vmul.f32 %v1175_v18, %v372_v24 }
  0x6d   : > { %v366_v32 = vadd.f32 %v364_v23, %v357_v19  ;;  %v382_v33 = vmul.f32 %v1179_v21, %v381_v28  ;;  %v390_v34 = vstv %s1156_s6  ;;  %s1207_s13 = sld [smem:[#allocation2 + $0x9]]  ;;  %v367_v36 = vadd.f32 %v365_v25, %v358_v22 }
  0x6e   : > { %v399_v38 = vstv %s1164_s7  ;;  %s1213_s14 = sld [smem:[#allocation2 + $0xa]]  ;;  %v383_v39 = vmul.f32 %v1189_v26, %v381_v28  ;;  %v391_v41 = vmul.f32 %v1194_v29, %v390_v34  ;;  %v392_v43 = vmul.f32 %v1200_v31, %v390_v34 }
  0x6f   : > { %v375_v40 = vadd.f32 %v373_v27, %v366_v32  ;;  %s1217_s15 = sld [smem:[#allocation2 + $0xb]]  ;;  %v376_v42 = vadd.f32 %v374_v30, %v367_v36  ;;  %v400_v44 = vmul.f32 %v1205_v35, %v399_v38  ;;  %v405_v45 = vstv %s1172_s8 }
  0x70   : > { %v411_v46 = vstv %s1181_s9  ;;  %s1223_s17 = sld [smem:[#allocation4 + $0x1]]  ;;  %v401_v47 = vmul.f32 %v1210_v37, %v399_v38 }
  0x71   : > { %v384_v48 = vadd.f32 %v382_v33, %v375_v40  ;;  %v412_v49 = vmul.f32 %v411_v46, %v1154_v12  ;;  %v415_v50 = vstv %s1185_s11  ;;  %s1228_s23 = sld [smem:[#allocation2 + $0xc]]  ;;  %v385_v51 = vadd.f32 %v383_v39, %v376_v42 }
  0x72   : > { %v416_v52 = vmul.f32 %v1162_v14, %v415_v50  ;;  %v421_v53 = vstv %s1196_s12  ;;  %s1232_s10 = sld [smem:[#allocation2 + $0xd]]  ;;  %v413_v54 = vmul.f32 %v411_v46, %v1159_v13  ;;  %v417_v55 = vmul.f32 %v1167_v15, %v415_v50 }
  0x73   : > { %v393_v56 = vadd.f32 %v391_v41, %v384_v48  ;;  %v422_v57 = vmul.f32 %v1170_v17, %v421_v53  ;;  %v427_v58 = vstv %s1207_s13  ;;  %s1238_s26 = sld [smem:[#allocation2 + $0xe]]  ;;  %v394_v59 = vadd.f32 %v392_v43, %v385_v51 }
  0x74   : > { %v418_v60 = vadd.f32 %v416_v52, %v412_v49  ;;  %v428_v61 = vmul.f32 %v1179_v21, %v427_v58  ;;  %v433_v62 = vstv %s1213_s14  ;;  %s1242_s28 = sld [smem:[#allocation2 + $0xf]]  ;;  %v419_v63 = vadd.f32 %v417_v55, %v413_v54 }
  0x75   : > { %v402_v0 = vadd.f32 %v400_v44, %v393_v56  ;;  %v439_v1 = vstv %s1217_s15  ;;  %s1245_s16 = sld [smem:[#allocation2 + $0x10]]  ;;  %v403_v2 = vadd.f32 %v401_v47, %v394_v59  ;;  %v434_v4 = vmul.f32 %v1194_v29, %v433_v62 }
  0x76   : > { %v424_v3 = vadd.f32 %v422_v57, %v418_v60  ;;  %v440_v5 = vmul.f32 %v1205_v35, %v439_v1  ;;  %s1249_s24 = sld [smem:[#allocation2 + $0x11]]  ;;  %v423_v6 = vmul.f32 %v1175_v18, %v421_v53  ;;  %v429_v10 = vmul.f32 %v1189_v26, %v427_v58 }
  0x77   : > { %v1252_v7 = vadd.f32 %v405_v45, %v402_v0  ;;  %v451_v8 = vstv %s1228_s23  ;;  %s1255_s29 = sld [smem:[#allocation4 + $0x2]]  ;;  %v1257_v9 = vadd.f32 %v405_v45, %v403_v2  ;;  %v445_v23 = vstv %s1223_s17 }
  0x78   : > { %v430_v11 = vadd.f32 %v428_v61, %v424_v3  ;;  %v452_v16 = vmul.f32 %v451_v8, %v1154_v12  ;;  %v455_v19 = vstv %s1232_s10  ;;  %s1262_s30 = sld [smem:[#allocation2 + $0x12]]  ;;  %v425_v20 = vadd.f32 %v423_v6, %v419_v63 }
  0x79   : > { %v408_v22 = vmax.f32 %v1252_v7, 0.0  ;;  %v456_v24 = vmul.f32 %v1162_v14, %v455_v19  ;;  %v461_v25 = vstv %s1238_s26  ;;  %s1268_s6 = sld [smem:[#allocation2 + $0x13]]  ;;  %v435_v38 = vmul.f32 %v1200_v31, %v433_v62 }
  0x7a   : > { %v436_v27 = vadd.f32 %v434_v4, %v430_v11  ;;  %v462_v28 = vmul.f32 %v1170_v17, %v461_v25  ;;  %v467_v30 = vstv %s1242_s28  ;;  %s1272_s7 = sld [smem:[#allocation2 + $0x14]]  ;;  %v431_v32 = vadd.f32 %v429_v10, %v425_v20 }
  0x7b   : > { %v458_v33 = vadd.f32 %v456_v24, %v452_v16  ;;  %v468_v34 = vmul.f32 %v1179_v21, %v467_v30  ;;  %v473_v36 = vstv %s1245_s16  ;;  %s1276_s8 = sld [smem:[#allocation2 + $0x15]]  ;;  %v409_v41 = vmax.f32 %v1257_v9, 0.0 }
  0x7c   : > { %v442_v39 = vadd.f32 %v440_v5, %v436_v27  ;;  %v479_v40 = vstv %s1249_s24  ;;  %s1280_s9 = sld [smem:[#allocation2 + $0x16]]  ;;  %v441_v42 = vmul.f32 %v1210_v37, %v439_v1  ;;  %v474_v44 = vmul.f32 %v1194_v29, %v473_v36 }
  0x7d   : > { %v464_v43 = vadd.f32 %v462_v28, %v458_v33  ;;  %v480_v45 = vmul.f32 %v1205_v35, %v479_v40  ;;  %s1286_s11 = sld [smem:[#allocation2 + $0x17]]  ;;  %v437_v46 = vadd.f32 %v435_v38, %v431_v32  ;;  %v453_v49 = vmul.f32 %v451_v8, %v1159_v13 }
  0x7e   : > { %v1288_v47 = vadd.f32 %v445_v23, %v442_v39  ;;  %v491_v48 = vstv %s1262_s30  ;;  %s1291_s12 = sld [smem:[#allocation4 + $0x3]]  ;;  %v457_v50 = vmul.f32 %v1167_v15, %v455_v19  ;;  %v485_v55 = vstv %s1255_s29  ;;  %s766_s29 = sshll.u32 %s324_s20, 5 }
  0x7f   : > { %v470_v51 = vadd.f32 %v468_v34, %v464_v43  ;;  %v492_v52 = vmul.f32 %v491_v48, %v1154_v12  ;;  %v495_v53 = vstv %s1268_s6  ;;  %s1297_s13 = sld [smem:[#allocation6]]  ;;  %v443_v54 = vadd.f32 %v441_v42, %v437_v46  ;;  %s350_s30 = scalar_lea.vmem [#allocation10], %s766_s29 }
  0x80   : > { %v496_v56 = vmul.f32 %v1162_v14, %v495_v53  ;;  %v501_v57 = vstv %s1272_s7  ;;  %s1302_s14 = sld [smem:[#allocation6 + $0x1]]  ;;  %v459_v58 = vadd.f32 %v457_v50, %v453_v49  ;;  %v463_v14 = vmul.f32 %v1175_v18, %v461_v25  ;;  %s819_s6 = sshll.u32 (%p1402_p10), %s1041_s21, 4 }
  0x81   : > { %v476_v59 = vadd.f32 %v474_v44, %v470_v51  ;;  %v502_v60 = vmul.f32 %v1170_v17, %v501_v57  ;;  %v507_v61 = vstv %s1276_s8  ;;  %s1306_s15 = sld [smem:[#allocation6 + $0x2]]  ;;  %v1308_v12 = vadd.f32 %v445_v23, %v443_v54  ;;  %s608_s7 = scalar_lea.vmem (%p1402_p10), %s1387_s5, %s819_s6 }
  0x82   : > { %v498_v62 = vadd.f32 %v496_v56, %v492_v52  ;;  %v508_v63 = vmul.f32 %v1179_v21, %v507_v61  ;;  %v513_v0 = vstv %s1280_s9  ;;  %s1312_s17 = sld [smem:[#allocation6 + $0x3]]  ;;  %v448_v1 = vmax.f32 %v1288_v47, 0.0 }
  0x83   : > { %v482_v2 = vadd.f32 %v480_v45, %v476_v59  ;;  %v514_v17 = vmul.f32 %v1194_v29, %v513_v0  ;;  %v519_v3 = vstv %s1286_s11  ;;  %s1318_s23 = sld [smem:[#allocation7]]  ;;  %v449_v21 = vmax.f32 %v1308_v12, 0.0 }
  0x84   : > { %v504_v4 = vadd.f32 %v502_v60, %v498_v62  ;;  %v520_v5 = vmul.f32 %v1205_v35, %v519_v3  ;;  %s1321_s10 = sld [smem:[#allocation6 + $0x4]]  ;;  %v465_v6 = vadd.f32 %v463_v14, %v459_v58  ;;  %v469_v29 = vmul.f32 %v1189_v26, %v467_v30 }
  0x85   : > { %v486_v8 = vadd.f32 %v485_v55, %v482_v2  ;;  %v531_v10 = vstv %s1297_s13  ;;  %s1327_s26 = sld [smem:[#allocation6 + $0x5]]  ;;  %v475_v11 = vmul.f32 %v1200_v31, %v473_v36  ;;  %v481_v20 = vmul.f32 %v1210_v37, %v479_v40 }
  0x86   : > { %v510_v16 = vadd.f32 %v508_v63, %v504_v4  ;;  %v532_v35 = vmul.f32 %v531_v10, %v408_v22  ;;  %v535_v19 = vstv %s1302_s14  ;;  %s1334_s28 = sld [smem:[#allocation6 + $0x6]]  ;;  %v471_v27 = vadd.f32 %v469_v29, %v465_v6 }
  0x87   : > { %v488_v23 = vmax.f32 %v486_v8, 0.0  ;;  %v536_v24 = vmul.f32 %v535_v19, %v448_v1  ;;  %v541_v25 = vstv %s1306_s15  ;;  %s1338_s16 = sld [smem:[#allocation6 + $0x7]]  ;;  %v525_v30 = vstv %s1291_s12 }
  0x88   : > { %v516_v28 = vadd.f32 %v514_v17, %v510_v16  ;;  %v493_v32 = vmul.f32 %v491_v48, %v1159_v13  ;;  %v497_v33 = vmul.f32 %v1167_v15, %v495_v53  ;;  %v547_v38 = vstv %s1312_s17  ;;  %s1344_s24 = sld [smem:[#allocation7 + $0x1]] }
  0x89   : > { %v538_v34 = vadd.f32 %v536_v24, %v532_v35  ;;  %v542_v36 = vmul.f32 %v541_v25, %v488_v23  ;;  %v477_v39 = vadd.f32 %v475_v11, %v471_v27  ;;  %v503_v44 = vmul.f32 %v1175_v18, %v501_v57 }
  0x8a   : > { %v522_v40 = vadd.f32 %v520_v5, %v516_v28  ;;  %v557_v42 = vstv %s1321_s10  ;;  %v499_v43 = vadd.f32 %v497_v33, %v493_v32  ;;  %v553_v45 = vstv %s1318_s23 }
  0x8b   : > { %v558_v13 = vmul.f32 %v557_v42, %v408_v22  ;;  %v561_v46 = vstv %s1327_s26  ;;  %v483_v15 = vadd.f32 %v481_v20, %v477_v39  ;;  %v509_v54 = vmul.f32 %v1189_v26, %v507_v61 }
  0x8c   : > { %v526_v47 = vadd.f32 %v525_v30, %v522_v40  ;;  %v562_v48 = vmul.f32 %v561_v46, %v448_v1  ;;  %v567_v49 = vstv %s1334_s28  ;;  %v505_v50 = vadd.f32 %v503_v44, %v499_v43 }
  0x8d   : > { %v568_v51 = vmul.f32 %v567_v49, %v488_v23  ;;  %v573_v52 = vstv %s1338_s16  ;;  %v487_v53 = vadd.f32 %v485_v55, %v483_v15  ;;  %v544_v58 = vadd.f32 %v542_v36, %v538_v34 }
  0x8e   : > { %v528_v56 = vmax.f32 %v526_v47, 0.0  ;;  %v564_v18 = vadd.f32 %v562_v48, %v558_v13  ;;  %v515_v57 = vmul.f32 %v1200_v31, %v513_v0  ;;  %v511_v22 = vadd.f32 %v509_v54, %v505_v50 }
  0x8f   : > { %v489_v7 = vmax.f32 %v487_v53, 0.0  ;;  %v521_v59 = vmul.f32 %v1210_v37, %v519_v3  ;;  %v533_v60 = vmul.f32 %v531_v10, %v409_v41  ;;  %v537_v14 = vmul.f32 %v535_v19, %v449_v21 }
  0x90   : > { %v548_v12 = vmul.f32 %v547_v38, %v528_v56  ;;  %v570_v62 = vadd.f32 %v568_v51, %v564_v18  ;;  %v574_v63 = vmul.f32 %v573_v52, %v528_v56  ;;  %v579_v1 = vstv %s1344_s24 }
  0x91   : > { %v517_v55 = vadd.f32 %v515_v57, %v511_v22  ;;  %v559_v26 = vmul.f32 %v557_v42, %v409_v41  ;;  %v563_v61 = vmul.f32 %v561_v46, %v449_v21  ;;  %v543_v31 = vmul.f32 %v541_v25, %v489_v7 }
  0x92   : > { %v550_v2 = vadd.f32 %v548_v12, %v544_v58  ;;  %v576_v17 = vadd.f32 %v574_v63, %v570_v62  ;;  %v539_v4 = vadd.f32 %v537_v14, %v533_v60  ;;  %v569_v37 = vmul.f32 %v567_v49, %v489_v7 }
  0x93   : > { %v523_v0 = vadd.f32 %v521_v59, %v517_v55  ;;  %v565_v5 = vadd.f32 %v563_v61, %v559_v26 }
  0x94   : > { %v554_v3 = vadd.f32 %v553_v45, %v550_v2  ;;  %v580_v6 = vadd.f32 %v579_v1, %v576_v17  ;;  %v545_v11 = vadd.f32 %v543_v31, %v539_v4 }
  0x95   : > { %v527_v8 = vadd.f32 %v525_v30, %v523_v0  ;;  %v571_v16 = vadd.f32 %v569_v37, %v565_v5 }
  0x96   : > { %v582_v10 = vsub.f32 %v580_v6, %v554_v3 }
  0x97   : > { %v529_v29 = vmax.f32 %v527_v8, 0.0 }
  0x98   : > { %v584_v35 = vmul.f32 1.442695, %v582_v10 }
  0x99   : > { %v549_v19 = vmul.f32 %v547_v38, %v529_v29  ;;  %v575_v9 = vmul.f32 %v573_v52, %v529_v29 }
  0x9a   : > { %887 = vpow2.f32 %v584_v35 }
  0x9b   : > { %v551_v41 = vadd.f32 %v549_v19, %v545_v11  ;;  %v577_v21 = vadd.f32 %v575_v9, %v571_v16 }
  0x9d   : > { %v555_v20 = vadd.f32 %v553_v45, %v551_v41  ;;  %v581_v23 = vadd.f32 %v579_v1, %v577_v21 }
  0x9f   : > { %v583_v24 = vsub.f32 %v581_v23, %v555_v20 }
  0xa1   : > { %v586_v25 = vmul.f32 1.442695, %v583_v24 }
  0xa3   : > { %889 = vpow2.f32 %v586_v25 }
  0xa7   : > { %v888_v27 = vpop.eup %887 }
  0xa8   : > { %v588_v28 = vadd.f32 1.0, %v888_v27 }
  0xaa   : > { %891 = vrcp.f32 %v588_v28 }
  0xb0   : > { %v890_v30 = vpop.eup %889 }
  0xb1   : > { %v589_v32 = vadd.f32 1.0, %v890_v30 }
  0xb3   : > { %893 = vrcp.f32 %v589_v32 }
  0xb7   : > { %v892_v33 = vpop.eup %891 }
  0xb8   : > { %592 = vst [vmem:[%s350_s30] sm:$0xff] %v892_v33  ;;  %v594_v34 = vsub.f32 1.0, %v892_v33 }
  0xba   : > { %811 = vst [vmem:[%s350_s30 + $0x10] sm:$0xff] %v594_v34 }
  0xbf   : > { %605 = sbr.rel (!%p1402_p10) target bundleno = 204 (0xcc), region = 98  ;;  %v643_v39 = vld [vmem:[%s350_s30] sm:$0xff] (%p1402_p10) }
  0xc0   : > { %v894_v36 = vpop.eup %893  ;;  %644 = vst [vmem:[%s608_s7] sm:$0xff] (%p1402_p10), %v643_v39 }
  0xc1   : > { %593 = vst [vmem:[%s350_s30 + $0x8] sm:$0xff] %v894_v36  ;;  %v595_v38 = vsub.f32 1.0, %v894_v36  ;;  %v647_v42 = vld [vmem:[%s350_s30 + $0x10] sm:$0xff] (%p1402_p10) }
  0xc2   : > { %648 = vst [vmem:[%s608_s7 + $0x20] sm:$0xff] (%p1402_p10), %v647_v42 }
  0xc3   : > { %812 = vst [vmem:[%s350_s30 + $0x18] sm:$0xff] %v595_v38 }
  0xc8   : > { %v645_v40 = vld [vmem:[%s350_s30 + $0x8] sm:$0xff] }
  0xc9   : > { %646 = vst [vmem:[%s608_s7 + $0x8] sm:$0xff] %v645_v40 }
  0xca   : > { %v649_v43 = vld [vmem:[%s350_s30 + $0x18] sm:$0xff] }
  0xcb   : > { %650 = vst [vmem:[%s608_s7 + $0x28] sm:$0xff] %v649_v43 }
  0xcc PF: > { %p15_p12 = scmp.ge.s32.totalorder %s1044_s22, 4   ;;  %s1403_s18 = smov %s985_s19 }
  0xcd   : > { %s1404_s19 = smov %s1054_s25  ;;  %s1405_s20 = smov %s1044_s22 }
  0xce   :  { %17 = sbr.rel (!%p15_p12) target bundleno = 4 (0x4), region = 174 }
  0xd3   :  { %666 = vsyncpa [#allocation3], 1 }
  0xd4   :  { %668 = vsyncpa [#allocation3 + $0x1], 1 }
  0xd5   :  { %669 = vsyncpa [#allocation5], 1 }
  0xd6   :  { %670 = vsyncpa [#allocation8], 1 }

</bundles_post_ra>
